<compile_context>
chip_gen: v7x
topology: tpu7x:2x2x1
jax: 0.10.0
libtpu: 0.0.40
codegen_flags: <defaults>
</compile_context>

<pallas_src>
import functools

import jax
import jax.numpy as jnp
from jax.experimental import pallas as pl
from jax.experimental.pallas import tpu as pltpu

LANE = 128
SUBLANE = 8


def _device_kind():
    try:
        return jax.devices()[0].device_kind.lower()
    except Exception:  # pragma: no cover - defensive
        return ""


def _tile_rows_cap():
    kind = _device_kind()
    if "v6" in kind or "v7" in kind or "7x" in kind:
        # 2 inputs x 2 buffers x 4 MiB = 16 MiB < 32 MiB default scoped VMEM.
        return 8192
    # v5e / v4 / unknown: 2 x 2 x 2 MiB = 8 MiB < 16 MiB default scoped VMEM.
    return 4096


def _num_core_splits():
    kind = _device_kind()
    return 2 if ("v7" in kind or "7x" in kind) else 1


def _dice_bce_kernel(tiles_per_split, total_tiles, rows_rem, binary_targets,
                     o_ref, t_ref, inter_ref, sums_ref, nll_ref):
    c = pl.program_id(0)   # core-split axis ("parallel")
    i = pl.program_id(1)   # row-block axis within the split ("arbitrary")

    @pl.when(i == 0)
    def _init():
        inter_ref[...] = jnp.zeros_like(inter_ref)
        sums_ref[...] = jnp.zeros_like(sums_ref)
        nll_ref[...] = jnp.zeros_like(nll_ref)

    def accumulate(o, t):
        # vreg-aligned regrouping; leading-axis sum is a pure VALU tree-add.
        o3 = o.reshape(-1, SUBLANE, LANE)
        t3 = t.reshape(-1, SUBLANE, LANE)
        inter_ref[...] += jnp.sum(o3 * t3, axis=0)
        sums_ref[...] += jnp.sum(o3 + t3, axis=0)
        if binary_targets:
            # Single log per element; exact only for hard 0/1 targets.
            p = jnp.where(t3 >= 0.5, o3, 1.0 - o3)
            nll_ref[...] += jnp.sum(jnp.maximum(jnp.log(p), -100.0), axis=0)
        else:
            # t*log(o) + (1-t)*log(1-o), rearranged to save VALU ops; PyTorch's
            # -100 log clamp makes zero (padded/masked) elements contribute 0.
            log_o = jnp.maximum(jnp.log(o3), -100.0)
            log_1mo = jnp.maximum(jnp.log(1.0 - o3), -100.0)
            nll_ref[...] += jnp.sum(log_1mo + t3 * (log_o - log_1mo), axis=0)

    o_raw = o_ref[...].astype(jnp.float32)
    t_raw = t_ref[...].astype(jnp.float32)

    if rows_rem == 0:
        # Tiles cover the row count exactly: no masking anywhere.
        accumulate(o_raw, t_raw)
    else:
        g = c * tiles_per_split + i          # global row-block index
        is_last = g == (total_tiles - 1)

        @pl.when(jnp.logical_not(is_last))
        def _full_block():
            accumulate(o_raw, t_raw)

        @pl.when(is_last)
        def _ragged_block():
            # Only the globally-last block contains out-of-bounds rows.
            row_idx = jax.lax.broadcasted_iota(jnp.int32, o_raw.shape, 0)
            valid = row_idx < rows_rem
            accumulate(jnp.where(valid, o_raw, 0.0),
                       jnp.where(valid, t_raw, 0.0))


def dice_bce_loss(outputs, targets, smooth=0.0, *, binary_targets=False,
                  max_tile_rows=None, num_splits=None):
    o = outputs.reshape(-1)
    t = targets.reshape(-1)
    n = o.shape[0]

    chunk = SUBLANE * LANE  # 1024
    if n % chunk != 0:
        # TODO(synk): this pad materializes an HBM copy of both flattened inputs;
        # typical NCHW sizes are multiples of 1024 and take the free-reshape path.
        pad = chunk - n % chunk
        o = jnp.pad(o, (0, pad))
        t = jnp.pad(t, (0, pad))
    rows = o.shape[0] // LANE          # always a multiple of 8
    o = o.reshape(rows, LANE)
    t = t.reshape(rows, LANE)

    if max_tile_rows is None:
        cap = _tile_rows_cap()
    else:
        cap = max(SUBLANE, (int(max_tile_rows) // SUBLANE) * SUBLANE)
    tile_rows = min(cap, rows)
    total_tiles = pl.cdiv(rows, tile_rows)
    rows_rem = rows % tile_rows

    n_splits = _num_core_splits() if num_splits is None else int(num_splits)
    if n_splits < 1 or total_tiles % n_splits != 0:
        n_splits = 1                   # uneven split would create OOB blocks
    tiles_per_split = total_tiles // n_splits

    kernel = functools.partial(
        _dice_bce_kernel, int(tiles_per_split), int(total_tiles),
        int(rows_rem), bool(binary_targets))

    part_shape = jax.ShapeDtypeStruct((n_splits, SUBLANE, LANE), jnp.float32)
    part_spec = pl.BlockSpec((None, SUBLANE, LANE), lambda c, i: (c, 0, 0))
    in_spec = pl.BlockSpec((tile_rows, LANE),
                           lambda c, i: (c * tiles_per_split + i, 0))

    inter_p, sums_p, nll_p = pl.pallas_call(
        kernel,
        out_shape=(part_shape, part_shape, part_shape),
        grid_spec=pltpu.PrefetchScalarGridSpec(
            num_scalar_prefetch=0,
            grid=(n_splits, tiles_per_split),
            in_specs=[in_spec, in_spec],
            out_specs=(part_spec, part_spec, part_spec),
        ),
        compiler_params=pltpu.CompilerParams(
            dimension_semantics=("parallel", "arbitrary"),
        ),
    )(o, t)

    # Tiny final combine in plain JAX (one cross-lane reduce per partial).
    intersection = jnp.sum(inter_p)
    total = jnp.sum(sums_p)
    nll = jnp.sum(nll_p)
    dice_loss = 1.0 - (2.0 * intersection + smooth) / (total + smooth)
    bce_loss = -nll / float(n)
    return dice_loss + bce_loss


def _reference(outputs, targets, smooth=0.0):
    o = outputs.reshape(-1).astype(jnp.float32)
    t = targets.reshape(-1).astype(jnp.float32)
    inter = jnp.sum(o * t)
    dice = 1.0 - (2.0 * inter + smooth) / (jnp.sum(o) + jnp.sum(t) + smooth)
    log_o = jnp.maximum(jnp.log(o), -100.0)
    log_1mo = jnp.maximum(jnp.log(1.0 - o), -100.0)
    bce = jnp.mean(-(t * log_o + (1.0 - t) * log_1mo))
    return dice + bce


if __name__ == "__main__":
    key = jax.random.PRNGKey(0)
    k1, k2, k3, k4 = jax.random.split(key, 4)

    # Primary small case consistent with the module: (B, C, H, W) = (2, 4, 16, 16)
    outputs = jax.nn.sigmoid(jax.random.normal(k1, (2, 4, 16, 16), jnp.float32))
    targets = (jax.random.uniform(k2, (2, 4, 16, 16)) > 0.5).astype(jnp.float32)
    ref = _reference(outputs, targets)

    loss = jax.block_until_ready(dice_bce_loss(outputs, targets))
    assert jnp.allclose(loss, ref, rtol=1e-5, atol=1e-5), (loss, ref)

    # Multi-tile + forced 2-way core split path (correct on 1-TC chips too).
    loss_mt = jax.block_until_ready(
        dice_bce_loss(outputs, targets, max_tile_rows=8, num_splits=2))
    assert jnp.allclose(loss_mt, ref, rtol=1e-5, atol=1e-5), (loss_mt, ref)

    # Ragged (masked) last block: rows=24, tile_rows=16 -> rows_rem=8.
    outputs3 = jax.nn.sigmoid(jax.random.normal(k3, (3, 4, 16, 16), jnp.float32))
    targets3 = (jax.random.uniform(k4, (3, 4, 16, 16)) > 0.5).astype(jnp.float32)
    ref3 = _reference(outputs3, targets3, smooth=1.0)
    loss3 = jax.block_until_ready(
        dice_bce_loss(outputs3, targets3, smooth=1.0, max_tile_rows=16))
    assert jnp.allclose(loss3, ref3, rtol=1e-5, atol=1e-5), (loss3, ref3)

    # Binary-target fast path (single log per element) matches for hard labels.
    loss_bin = jax.block_until_ready(
        dice_bce_loss(outputs, targets, binary_targets=True))
    assert jnp.allclose(loss_bin, ref, rtol=1e-5, atol=1e-5), (loss_bin, ref)

    # Non-lane-aligned size exercises the documented pad fallback.
    o_small = jax.nn.sigmoid(jax.random.normal(k1, (2, 3, 13, 7), jnp.float32))
    t_small = (jax.random.uniform(k2, (2, 3, 13, 7)) > 0.5).astype(jnp.float32)
    loss_s = jax.block_until_ready(dice_bce_loss(o_small, t_small))
    assert jnp.allclose(loss_s, _reference(o_small, t_small),
                        rtol=1e-5, atol=1e-5), loss_s

    print("KERNEL_OK")
</pallas_src>

<mosaic_0001>
module attributes {stable_mosaic.version = 11 : i64} {
  func.func @_dice_bce_kernel(%arg0: i32, %arg1: i32, %arg2: memref<16x128xf32, #tpu.memory_space<vmem>>, %arg3: memref<16x128xf32, #tpu.memory_space<vmem>>, %arg4: memref<1x8x128xf32, #tpu.memory_space<vmem>>, %arg5: memref<1x8x128xf32, #tpu.memory_space<vmem>>, %arg6: memref<1x8x128xf32, #tpu.memory_space<vmem>>) attributes {dimension_semantics = [#tpu.dimension_semantics<parallel>, #tpu.dimension_semantics<arbitrary>], iteration_bounds = array<i64: 1, 1>, scalar_prefetch = 0 : i64, scratch_operands = 0 : i64, tpu.core_type = #tpu.core_type<tc>, window_params = [{transform_indices = @transform_0, window_bounds = array<i64: 16, 128>}, {transform_indices = @transform_1, window_bounds = array<i64: 16, 128>}, {transform_indices = @transform_2, window_bounds = array<i64: 1, 8, 128>}, {transform_indices = @transform_3, window_bounds = array<i64: 1, 8, 128>}, {transform_indices = @transform_4, window_bounds = array<i64: 1, 8, 128>}]} {
    %c0_i32 = arith.constant 0 : i32
    %0 = arith.cmpi eq, %arg1, %c0_i32 : i32
    %1 = arith.extui %0 : i1 to i32
    %c0_i32_0 = arith.constant 0 : i32
    %2 = arith.cmpi ne, %1, %c0_i32_0 : i32
    scf.if %2 {
      %cst_27 = arith.constant 0.000000e+00 : f32
      %41 = vector.broadcast %cst_27 : f32 to vector<8x128xf32>
      %c0_28 = arith.constant 0 : index
      %c0_29 = arith.constant 0 : index
      %c0_30 = arith.constant 0 : index
      %42 = vector.load %arg4[%c0_28, %c0_29, %c0_30] : memref<1x8x128xf32, #tpu.memory_space<vmem>>, vector<1x8x128xf32>
      %43 = vector.shape_cast %42 : vector<1x8x128xf32> to vector<8x128xf32>
      %44 = vector.shape_cast %41 : vector<8x128xf32> to vector<1x8x128xf32>
      tpu.vector_store %arg4[%c0_28, %c0_29, %c0_30], %44 {strides = array<i32>} : memref<1x8x128xf32, #tpu.memory_space<vmem>>, vector<1x8x128xf32>,
      %cst_31 = arith.constant 0.000000e+00 : f32
      %45 = vector.broadcast %cst_31 : f32 to vector<8x128xf32>
      %c0_32 = arith.constant 0 : index
      %c0_33 = arith.constant 0 : index
      %c0_34 = arith.constant 0 : index
      %46 = vector.load %arg5[%c0_32, %c0_33, %c0_34] : memref<1x8x128xf32, #tpu.memory_space<vmem>>, vector<1x8x128xf32>
      %47 = vector.shape_cast %46 : vector<1x8x128xf32> to vector<8x128xf32>
      %48 = vector.shape_cast %45 : vector<8x128xf32> to vector<1x8x128xf32>
      tpu.vector_store %arg5[%c0_32, %c0_33, %c0_34], %48 {strides = array<i32>} : memref<1x8x128xf32, #tpu.memory_space<vmem>>, vector<1x8x128xf32>,
      %cst_35 = arith.constant 0.000000e+00 : f32
      %49 = vector.broadcast %cst_35 : f32 to vector<8x128xf32>
      %c0_36 = arith.constant 0 : index
      %c0_37 = arith.constant 0 : index
      %c0_38 = arith.constant 0 : index
      %50 = vector.load %arg6[%c0_36, %c0_37, %c0_38] : memref<1x8x128xf32, #tpu.memory_space<vmem>>, vector<1x8x128xf32>
      %51 = vector.shape_cast %50 : vector<1x8x128xf32> to vector<8x128xf32>
      %52 = vector.shape_cast %49 : vector<8x128xf32> to vector<1x8x128xf32>
      tpu.vector_store %arg6[%c0_36, %c0_37, %c0_38], %52 {strides = array<i32>} : memref<1x8x128xf32, #tpu.memory_space<vmem>>, vector<1x8x128xf32>,
    } else {
    }
    %c0 = arith.constant 0 : index
    %c0_1 = arith.constant 0 : index
    %3 = vector.load %arg2[%c0, %c0_1] : memref<16x128xf32, #tpu.memory_space<vmem>>, vector<16x128xf32>
    %c0_2 = arith.constant 0 : index
    %c0_3 = arith.constant 0 : index
    %4 = vector.load %arg3[%c0_2, %c0_3] : memref<16x128xf32, #tpu.memory_space<vmem>>, vector<16x128xf32>
    %5 = vector.shape_cast %3 : vector<16x128xf32> to vector<2x8x128xf32>
    %6 = vector.shape_cast %4 : vector<16x128xf32> to vector<2x8x128xf32>
    %c0_4 = arith.constant 0 : index
    %c0_5 = arith.constant 0 : index
    %c0_6 = arith.constant 0 : index
    %7 = vector.load %arg4[%c0_4, %c0_5, %c0_6] : memref<1x8x128xf32, #tpu.memory_space<vmem>>, vector<1x8x128xf32>
    %8 = vector.shape_cast %7 : vector<1x8x128xf32> to vector<8x128xf32>
    %9 = arith.mulf %5, %6 : vector<2x8x128xf32>
    %cst = arith.constant dense<0.000000e+00> : vector<8x128xf32>
    %10 = vector.multi_reduction <add>, %9, %cst [0] : vector<2x8x128xf32> to vector<8x128xf32>
    %11 = arith.addf %8, %10 : vector<8x128xf32>
    %c0_7 = arith.constant 0 : index
    %c0_8 = arith.constant 0 : index
    %c0_9 = arith.constant 0 : index
    %12 = vector.load %arg4[%c0_7, %c0_8, %c0_9] : memref<1x8x128xf32, #tpu.memory_space<vmem>>, vector<1x8x128xf32>
    %13 = vector.shape_cast %12 : vector<1x8x128xf32> to vector<8x128xf32>
    %14 = vector.shape_cast %11 : vector<8x128xf32> to vector<1x8x128xf32>
    tpu.vector_store %arg4[%c0_7, %c0_8, %c0_9], %14 {strides = array<i32>} : memref<1x8x128xf32, #tpu.memory_space<vmem>>, vector<1x8x128xf32>,
    %c0_10 = arith.constant 0 : index
    %c0_11 = arith.constant 0 : index
    %c0_12 = arith.constant 0 : index
    %15 = vector.load %arg5[%c0_10, %c0_11, %c0_12] : memref<1x8x128xf32, #tpu.memory_space<vmem>>, vector<1x8x128xf32>
    %16 = vector.shape_cast %15 : vector<1x8x128xf32> to vector<8x128xf32>
    %17 = arith.addf %5, %6 : vector<2x8x128xf32>
    %cst_13 = arith.constant dense<0.000000e+00> : vector<8x128xf32>
    %18 = vector.multi_reduction <add>, %17, %cst_13 [0] : vector<2x8x128xf32> to vector<8x128xf32>
    %19 = arith.addf %16, %18 : vector<8x128xf32>
    %c0_14 = arith.constant 0 : index
    %c0_15 = arith.constant 0 : index
    %c0_16 = arith.constant 0 : index
    %20 = vector.load %arg5[%c0_14, %c0_15, %c0_16] : memref<1x8x128xf32, #tpu.memory_space<vmem>>, vector<1x8x128xf32>
    %21 = vector.shape_cast %20 : vector<1x8x128xf32> to vector<8x128xf32>
    %22 = vector.shape_cast %19 : vector<8x128xf32> to vector<1x8x128xf32>
    tpu.vector_store %arg5[%c0_14, %c0_15, %c0_16], %22 {strides = array<i32>} : memref<1x8x128xf32, #tpu.memory_space<vmem>>, vector<1x8x128xf32>,
    %23 = math.log %5 : vector<2x8x128xf32>
    %cst_17 = arith.constant -1.000000e+02 : f32
    %24 = vector.broadcast %cst_17 : f32 to vector<2x8x128xf32>
    %25 = arith.maximumf %23, %24 : vector<2x8x128xf32>
    %cst_18 = arith.constant 1.000000e+00 : f32
    %26 = vector.broadcast %cst_18 : f32 to vector<2x8x128xf32>
    %27 = arith.subf %26, %5 : vector<2x8x128xf32>
    %28 = math.log %27 : vector<2x8x128xf32>
    %cst_19 = arith.constant -1.000000e+02 : f32
    %29 = vector.broadcast %cst_19 : f32 to vector<2x8x128xf32>
    %30 = arith.maximumf %28, %29 : vector<2x8x128xf32>
    %c0_20 = arith.constant 0 : index
    %c0_21 = arith.constant 0 : index
    %c0_22 = arith.constant 0 : index
    %31 = vector.load %arg6[%c0_20, %c0_21, %c0_22] : memref<1x8x128xf32, #tpu.memory_space<vmem>>, vector<1x8x128xf32>
    %32 = vector.shape_cast %31 : vector<1x8x128xf32> to vector<8x128xf32>
    %33 = arith.subf %25, %30 : vector<2x8x128xf32>
    %34 = arith.mulf %6, %33 : vector<2x8x128xf32>
    %35 = arith.addf %30, %34 : vector<2x8x128xf32>
    %cst_23 = arith.constant dense<0.000000e+00> : vector<8x128xf32>
    %36 = vector.multi_reduction <add>, %35, %cst_23 [0] : vector<2x8x128xf32> to vector<8x128xf32>
    %37 = arith.addf %32, %36 : vector<8x128xf32>
    %c0_24 = arith.constant 0 : index
    %c0_25 = arith.constant 0 : index
    %c0_26 = arith.constant 0 : index
    %38 = vector.load %arg6[%c0_24, %c0_25, %c0_26] : memref<1x8x128xf32, #tpu.memory_space<vmem>>, vector<1x8x128xf32>
    %39 = vector.shape_cast %38 : vector<1x8x128xf32> to vector<8x128xf32>
    %40 = vector.shape_cast %37 : vector<8x128xf32> to vector<1x8x128xf32>
    tpu.vector_store %arg6[%c0_24, %c0_25, %c0_26], %40 {strides = array<i32>} : memref<1x8x128xf32, #tpu.memory_space<vmem>>, vector<1x8x128xf32>,
    return
  }
  func.func @transform_0(%arg0: i32, %arg1: i32) -> (i32, i32) {
    %c1_i32 = arith.constant 1 : i32
    %0 = arith.muli %arg0, %c1_i32 : i32
    %1 = arith.addi %0, %arg1 : i32
    %c0_i32 = arith.constant 0 : i32
    %c0_i32_0 = arith.constant 0 : i32
    return %1, %c0_i32 : i32, i32
  }
  func.func @transform_1(%arg0: i32, %arg1: i32) -> (i32, i32) {
    %c1_i32 = arith.constant 1 : i32
    %0 = arith.muli %arg0, %c1_i32 : i32
    %1 = arith.addi %0, %arg1 : i32
    %c0_i32 = arith.constant 0 : i32
    %c0_i32_0 = arith.constant 0 : i32
    return %1, %c0_i32 : i32, i32
  }
  func.func @transform_2(%arg0: i32, %arg1: i32) -> (i32, i32, i32) {
    %c0_i32 = arith.constant 0 : i32
    %c0_i32_0 = arith.constant 0 : i32
    %c0_i32_1 = arith.constant 0 : i32
    return %arg0, %c0_i32, %c0_i32_0 : i32, i32, i32
  }
  func.func @transform_3(%arg0: i32, %arg1: i32) -> (i32, i32, i32) {
    %c0_i32 = arith.constant 0 : i32
    %c0_i32_0 = arith.constant 0 : i32
    %c0_i32_1 = arith.constant 0 : i32
    return %arg0, %c0_i32, %c0_i32_0 : i32, i32, i32
  }
  func.func @transform_4(%arg0: i32, %arg1: i32) -> (i32, i32, i32) {
    %c0_i32 = arith.constant 0 : i32
    %c0_i32_0 = arith.constant 0 : i32
    %c0_i32_1 = arith.constant 0 : i32
    return %arg0, %c0_i32, %c0_i32_0 : i32, i32, i32
  }
}

</mosaic_0001>

<bundles_post_ra>
// kernel: tpu_custom_call.1
= control target key start
LH: loop header
LB: loop body
LE: loop exit
PB: predicated region body
PF: predicated region fallthrough
CT: control target
= control target key end

     0   :  { %10 = vsyncpa [#allocation3], 0  ;;  %s372_s0 = inlined_call_operand.hbm [shape: f32[16,128], index: 0, kind: input, shape index: {}]   ;;  %s373_s1 = inlined_call_operand.hbm [shape: f32[16,128], index: 1, kind: input, shape index: {}]   ;;  %s374_s2 = inlined_call_operand.hbm [shape: f32[1,8,128], index: 2, kind: output, shape index: {0}]   ;;  %s375_s3 = inlined_call_operand.hbm [shape: f32[1,8,128], index: 3, kind: output, shape index: {1}]   ;;  %s376_s4 = inlined_call_operand.hbm [shape: f32[1,8,128], index: 4, kind: output, shape index: {2}]  }
   0x1   :  { %11 = vsyncpa [#allocation6], 0 }
   0x2   :  { %12 = vsyncpa [#allocation4], 0 }
   0x3   :  { %13 = vsyncpa [#allocation9], 0  ;;  %s280_s15 = smov [#allocation2]   ;;  %s162_s19 = scalar_lea.hbm %s372_s0, 256 }
   0x4   :  { %s23_s16 = sshll.u32 %s280_s15, 4  ;;  %p163_p0 = scmp.ne.s32.totalorder %s372_s0, %s162_s19  ;;  %s24_s16 = int_to_ptr.vmem [resolvable:$true] %s23_s16 }
   0x5   :  { %p166_p1 = scmp.lt.u32.totalorder %s162_s19, %s372_s0 }
   0x7   :  { %p168_p2 = pnand %p166_p1, %p163_p0 }
   0x9   :  { %171 = shalt.err (!%p168_p2)
}
   0xa   :  { %s172_s24 = scalar_lea.vmem %s24_s16, 256  ;;  %p177_p4 = scmp.lt.s32.totalorder %s24_s16, %s24_s16 }
   0xb   :  { %p173_p3 = scmp.ne.s32.totalorder %s24_s16, %s172_s24  ;;  %p178_p5 = scmp.lt.s32.totalorder %s172_s24, %s172_s24 }
   0xd   :  { %p179_p6 = por %p178_p5, %p177_p4 }
   0xf   :  { %p180_p7 = pnand %p179_p6, %p173_p3 }
  0x11   :  { %183 = shalt.err (!%p180_p7)
}
  0x12   :  { %s281_s25 = smov 128   ;;  %s282_s26 = smov 8  }
  0x13   :  { %29 = dma.hbm_to_vmem [thread:$0]  %s372_s0, 256, %s24_s16, [#allocation3], %s281_s25, %s281_s25, %s282_s26  }
  0x14   :  { %s283_s29 = smov [#allocation5]   ;;  %s184_s7 = scalar_lea.hbm %s373_s1, 256 }
  0x15   :  { %s39_s30 = sshll.u32 %s283_s29, 4  ;;  %p185_p8 = scmp.ne.s32.totalorder %s373_s1, %s184_s7  ;;  %s40_s30 = int_to_ptr.vmem [resolvable:$true] %s39_s30 }
  0x16   :  { %p188_p9 = scmp.lt.u32.totalorder %s184_s7, %s373_s1 }
  0x18   :  { %p190_p10 = pnand %p188_p9, %p185_p8 }
  0x1a   :  { %193 = shalt.err (!%p190_p10)
}
  0x1b   :  { %s194_s12 = scalar_lea.vmem %s40_s30, 256  ;;  %p199_p12 = scmp.lt.s32.totalorder %s40_s30, %s40_s30 }
  0x1c   :  { %p195_p11 = scmp.ne.s32.totalorder %s40_s30, %s194_s12  ;;  %p200_p13 = scmp.lt.s32.totalorder %s194_s12, %s194_s12 }
  0x1e   :  { %p201_p0 = por %p200_p13, %p199_p12 }
  0x20   :  { %p202_p1 = pnand %p201_p0, %p195_p11 }
  0x22   :  { %205 = shalt.err (!%p202_p1)
}
  0x23   :  { %45 = dma.hbm_to_vmem [thread:$0]  %s373_s1, 256, %s40_s30, [#allocation6], %s281_s25, %s281_s25, %s282_s26  }
  0x24   :  { %272 = dma.done.wait [#allocation3], 256  }
  0x25   :  { %273 = vsyncadd [#allocation3], 4294967040 }
  0x26   :  { %274 = dma.done.wait [#allocation6], 256  }
  0x27   :  { %275 = vsyncadd [#allocation6], 4294967040  ;;  %v63_v0 = vld [vmem:[#allocation2] sm:$0xff]  ;;  %v64_v1 = vld [vmem:[#allocation2 + $0x8] sm:$0xff]  ;;  %s284_s14 = smov [#allocation8]   ;;  %s285_s1 = smov [#allocation7]  }
  0x28   :  { %v65_v2 = vld [vmem:[#allocation5] sm:$0xff]  ;;  %v66_v3 = vld [vmem:[#allocation5 + $0x8] sm:$0xff]  ;;  %154 = vlog2.f32 %v63_v0  ;;  %v85_v6 = vsub.f32 1.0, %v63_v0  ;;  %v86_v9 = vsub.f32 1.0, %v64_v1  ;;  %s119_s15 = sshll.u32 %s284_s14, 4  ;;  %s109_s16 = sshll.u32 %s285_s1, 4  ;;  %s120_s15 = int_to_ptr.vmem [resolvable:$true] %s119_s15  ;;  %s110_s16 = int_to_ptr.vmem [resolvable:$true] %s109_s16 }
  0x29   :  { %v74_v4 = vadd.f32 %v65_v2, %v63_v0  ;;  %v68_v5 = vmul.f32 %v65_v2, %v63_v0  ;;  %v75_v7 = vadd.f32 %v66_v3, %v64_v1  ;;  %156 = vlog2.f32 %v64_v1  ;;  %s206_s17 = scalar_lea.vmem %s120_s15, 128  ;;  %p211_p3 = scmp.lt.s32.totalorder %s120_s15, %s120_s15 }
  0x2a   :  { %v69_v8 = vmul.f32 %v66_v3, %v64_v1  ;;  %158 = vlog2.f32 %v85_v6  ;;  %p207_p2 = scmp.ne.s32.totalorder %s120_s15, %s206_s17  ;;  %p212_p4 = scmp.lt.s32.totalorder %s206_s17, %s206_s17 }
  0x2b   :  { %v76_v10 = vadd.f32 %v75_v7, %v74_v4  ;;  %160 = vlog2.f32 %v86_v9 }
  0x2c   :  { %v70_v11 = vadd.f32 %v69_v8, %v68_v5  ;;  %p213_p5 = por %p212_p4, %p211_p3 }
  0x2d   :  { %78 = vst [vmem:[#allocation8] sm:$0xff] %v76_v10 }
  0x2e   :  { %72 = vst [vmem:[#allocation7] sm:$0xff] %v70_v11  ;;  %p214_p6 = pnand %p213_p5, %p207_p2 }
  0x30   :  { %217 = shalt.err (!%p214_p6)
}
  0x31   :  { %s218_s20 = scalar_lea.hbm %s375_s3, 128 }
  0x32   :  { %p219_p7 = scmp.ne.s32.totalorder %s375_s3, %s218_s20  ;;  %p222_p8 = scmp.lt.u32.totalorder %s218_s20, %s375_s3 }
  0x34   :  { %p224_p9 = pnand %p222_p8, %p219_p7 }
  0x36   :  { %227 = shalt.err (!%p224_p9)
}
  0x37   :  { %122 = dma.vmem_to_hbm [thread:$0]  %s120_s15, 128, %s375_s3, [#allocation9]  }
  0x38   :  { %s228_s27 = scalar_lea.vmem %s110_s16, 128  ;;  %p233_p11 = scmp.lt.s32.totalorder %s110_s16, %s110_s16 }
  0x39   :  { %p229_p10 = scmp.ne.s32.totalorder %s110_s16, %s228_s27  ;;  %p234_p12 = scmp.lt.s32.totalorder %s228_s27, %s228_s27 }
  0x3b   :  { %p235_p13 = por %p234_p12, %p233_p11 }
  0x3d   :  { %p236_p0 = pnand %p235_p13, %p229_p10 }
  0x3f   :  { %239 = shalt.err (!%p236_p0)
}
  0x40   :  { %s240_s30 = scalar_lea.hbm %s374_s2, 128 }
  0x41   :  { %p241_p1 = scmp.ne.s32.totalorder %s374_s2, %s240_s30  ;;  %p244_p2 = scmp.lt.u32.totalorder %s240_s30, %s374_s2 }
  0x43   :  { %p246_p3 = pnand %p244_p2, %p241_p1 }
  0x45   :  { %249 = shalt.err (!%p246_p3)
}
  0x46   :  { %112 = dma.vmem_to_hbm [thread:$0]  %s110_s16, 128, %s374_s2, [#allocation4]   ;;  %v155_v12 = vpop.eup %154 }
  0x47   :  { %v157_v13 = vpop.eup %156  ;;  %v80_v14 = vmul.f32 0.6931472, %v155_v12  ;;  %s286_s10 = smov [#allocation10]  }
  0x48   :  { %v159_v15 = vpop.eup %158  ;;  %v82_v16 = vmul.f32 0.6931472, %v157_v13  ;;  %s129_s2 = sshll.u32 %s286_s10, 4  ;;  %s130_s2 = int_to_ptr.vmem [resolvable:$true] %s129_s2 }
  0x49   :  { %v161_v17 = vpop.eup %160  ;;  %v83_v18 = vmax.f32 %v80_v14, -100.0  ;;  %v88_v19 = vmul.f32 0.6931472, %v159_v15  ;;  %s250_s11 = scalar_lea.vmem %s130_s2, 128  ;;  %p255_p5 = scmp.lt.s32.totalorder %s130_s2, %s130_s2 }
  0x4a   :  { %v84_v20 = vmax.f32 %v82_v16, -100.0  ;;  %v90_v21 = vmul.f32 0.6931472, %v161_v17  ;;  %p251_p4 = scmp.ne.s32.totalorder %s130_s2, %s250_s11  ;;  %p256_p6 = scmp.lt.s32.totalorder %s250_s11, %s250_s11 }
  0x4b   :  { %v91_v22 = vmax.f32 %v88_v19, -100.0 }
  0x4c   :  { %v92_v23 = vmax.f32 %v90_v21, -100.0  ;;  %p257_p7 = por %p256_p6, %p255_p5 }
  0x4d   :  { %v94_v24 = vsub.f32 %v83_v18, %v91_v22 }
  0x4e   :  { %v95_v25 = vsub.f32 %v84_v20, %v92_v23  ;;  %p258_p8 = pnand %p257_p7, %p251_p4 }
  0x4f   :  { %v96_v26 = vmul.f32 %v94_v24, %v65_v2 }
  0x50   :  { %v97_v27 = vmul.f32 %v95_v25, %v66_v3 }
  0x51   :  { %v98_v28 = vadd.f32 %v96_v26, %v91_v22 }
  0x52   :  { %v99_v29 = vadd.f32 %v97_v27, %v92_v23 }
  0x54   :  { %v100_v30 = vadd.f32 %v99_v29, %v98_v28 }
  0x56   :  { %102 = vst [vmem:[#allocation10] sm:$0xff] %v100_v30 }
  0x57   :  { %261 = shalt.err (!%p258_p8)
}
  0x58   :  { %s262_s13 = scalar_lea.hbm %s376_s4, 128 }
  0x59   :  { %p263_p9 = scmp.ne.s32.totalorder %s376_s4, %s262_s13  ;;  %p266_p10 = scmp.lt.u32.totalorder %s262_s13, %s376_s4 }
  0x5b   :  { %p268_p11 = pnand %p266_p10, %p263_p9 }
  0x5d   :  { %271 = shalt.err (!%p268_p11)
}
  0x5e   :  { %132 = dma.vmem_to_hbm [thread:$0]  %s130_s2, 128, %s376_s4, [#allocation9]  }
  0x5f   :  { %276 = dma.done.wait [#allocation4], 128  }
  0x60   :  { %277 = vsyncadd [#allocation4], 4294967168 }
  0x61   :  { %278 = dma.done.wait [#allocation9], 256  }
  0x62   :  { %279 = vsyncadd [#allocation9], 4294967040 }
  0x63   :  { %142 = vsyncpa [#allocation3], 1 }
  0x64   :  { %143 = vsyncpa [#allocation6], 1 }
  0x65   :  { %144 = vsyncpa [#allocation4], 1 }
  0x66   :  { %145 = vsyncpa [#allocation9], 1 }

</bundles_post_ra>
